<compile_context>
chip_gen: v5e
topology: v5e:2x2
jax: 0.10.0
libtpu: 0.0.40
codegen_flags: <defaults>
</compile_context>

<pallas_src>
import jax
import jax.numpy as jnp
from jax.experimental import pallas as pl
from jax.experimental.pallas import tpu as pltpu

NUM_STATE = 3   # Pendulum-v0 observation_space.shape[0]
H1 = 64
H2 = 8
OUT = 1
NEG_SLOPE = 0.01       # F.leaky_relu default
TILE_B_MAX = 32768     # lanes per grid step (sweepable 8192..32768)
VMEM_LIMIT_BYTES = 48 * 1024 * 1024   # headroom, still < v7x's 64 MiB physical


def _leaky_relu(x):
    # Exact for 0 < NEG_SLOPE < 1; single VALU max instead of compare+select.
    return jnp.maximum(x, NEG_SLOPE * x)


def critic_kernel(x_ref, w1_ref, b1_ref, w2_ref, b2_ref, w3_ref, b3_ref, out_ref):
    x = x_ref[...]                                                       # (3, TB)

    # fc1: 3 -> 64 on the MXU.  K=3 "wastes" MXU headroom but the MXU /
    # vector-extended slot is nearly idle and this frees the binding VALU slot.
    h1 = jnp.dot(w1_ref[...], x, preferred_element_type=jnp.float32)    # (64, TB)
    h1 = _leaky_relu(h1 + b1_ref[...])

    # fc2: 64 -> 8, MXU.
    h2 = jnp.dot(w2_ref[...], h1, preferred_element_type=jnp.float32)   # (8, TB)
    h2 = _leaky_relu(h2 + b2_ref[...])

    # state_value: 8 -> 1 as VPU multiply + cheap 8-sublane reduce (XLU slot).
    v = jnp.sum(w3_ref[...] * h2, axis=0, keepdims=True) + b3_ref[...]  # (1, TB)
    out_ref[...] = v.astype(out_ref.dtype)


def _choose_tile_b(B, max_tile=TILE_B_MAX):
    """Pick the batch tile (lane) width."""
    if B <= 128:
        return 128                       # tiny-batch (acting) fast path
    if B <= 2 * max_tile:
        # Split into (at most) two tiles so the "parallel" grid axis can feed
        # both TensorCores on v7x; keep lanes 128-aligned.
        half = (B + 1) // 2
        return min(max_tile, ((half + 127) // 128) * 128)
    return max_tile


def critic_forward(x, params, *, feature_major=False, max_tile=TILE_B_MAX):
    """Forward pass matching the PyTorch Critic.

    x: (B, num_state)  (or (num_state, B) if feature_major=True)
    returns: (B, 1)
    """
    w1, b1, w2, b2, w3, b3 = params

    if feature_major:
        xT = x.astype(jnp.float32)                       # already (NUM_STATE, B)
    else:
        xT = jnp.transpose(x).astype(jnp.float32)        # (NUM_STATE, B)
    B = xT.shape[1]

    tile_b = _choose_tile_b(B, max_tile)
    Bk = B
    if B < tile_b:                                       # only tiny batches pad
        Bk = tile_b
        xT = jnp.pad(xT, ((0, 0), (0, Bk - B)))
    n_tiles = pl.cdiv(Bk, tile_b)                        # ragged final block ok

    def const_spec(arr):
        # Full-array block, constant index -> resident in VMEM, DMA'd once.
        return pl.BlockSpec(arr.shape, lambda i: (0, 0))

    out = pl.pallas_call(
        critic_kernel,
        out_shape=jax.ShapeDtypeStruct((OUT, Bk), jnp.float32),
        grid=(n_tiles,),
        in_specs=[
            pl.BlockSpec((NUM_STATE, tile_b), lambda i: (0, i)),   # x tile
            const_spec(w1), const_spec(b1),
            const_spec(w2), const_spec(b2),
            const_spec(w3), const_spec(b3),
        ],
        out_specs=pl.BlockSpec((OUT, tile_b), lambda i: (0, i)),
        compiler_params=pltpu.CompilerParams(
            dimension_semantics=("parallel",),
            vmem_limit_bytes=VMEM_LIMIT_BYTES,
        ),
    )(xT, w1, b1, w2, b2, w3, b3)

    return out[0, :B].reshape(B, OUT)                    # cheap reshape, no copy-transpose


def init_params(key):
    """PyTorch nn.Linear default init: U(-1/sqrt(fan_in), 1/sqrt(fan_in)).
    Weights stored (out_features, in_features) except w3, stored as (8, 1)."""
    def linear(key, fan_in, fan_out):
        kw, kb = jax.random.split(key)
        bound = 1.0 / jnp.sqrt(jnp.float32(fan_in))
        w = jax.random.uniform(kw, (fan_out, fan_in), jnp.float32, -bound, bound)
        b = jax.random.uniform(kb, (fan_out, 1), jnp.float32, -bound, bound)
        return w, b

    k1, k2, k3 = jax.random.split(key, 3)
    w1, b1 = linear(k1, NUM_STATE, H1)          # (64,3), (64,1)
    w2, b2 = linear(k2, H1, H2)                 # (8,64), (8,1)
    w3_row, b3 = linear(k3, H2, OUT)            # (1,8),  (1,1)
    w3 = jnp.transpose(w3_row)                  # (8,1) column for the kernel
    return (w1, b1, w2, b2, w3, b3)


def critic_reference(x, params):
    """Pure-JAX reference matching the PyTorch module (batch-major)."""
    w1, b1, w2, b2, w3, b3 = params
    h1 = _leaky_relu(x @ w1.T + b1.T)           # (B, 64)
    h2 = _leaky_relu(h1 @ w2.T + b2.T)          # (B, 8)
    return h2 @ w3 + b3                         # (B, 1)


if __name__ == "__main__":
    key = jax.random.PRNGKey(0)
    k_params, k_x1, k_x2 = jax.random.split(key, 3)
    params = init_params(k_params)

    # Small single-tile case (single-env acting batch; exercises pad-to-128 path).
    batch = 8
    x = jax.random.normal(k_x1, (batch, NUM_STATE), jnp.float32)
    value = jax.block_until_ready(critic_forward(x, params))
    ref = critic_reference(x, params)
    assert value.shape == (batch, OUT)
    assert jnp.allclose(value, ref, atol=1e-4, rtol=1e-4), "mismatch (B=8)"

    # Multi-tile case exercising the two-tile grid and the ragged final block
    # (no wrapper padding on this path).
    batch2 = 1000
    x2 = jax.random.normal(k_x2, (batch2, NUM_STATE), jnp.float32)
    value2 = jax.block_until_ready(critic_forward(x2, params))
    ref2 = critic_reference(x2, params)
    assert value2.shape == (batch2, OUT)
    assert jnp.allclose(value2, ref2, atol=1e-4, rtol=1e-4), "mismatch (B=1000)"

    # Feature-major input path (recommended upstream layout: no transpose copy).
    value3 = jax.block_until_ready(
        critic_forward(jnp.transpose(x2), params, feature_major=True))
    assert jnp.allclose(value3, ref2, atol=1e-4, rtol=1e-4), "mismatch (feature-major)"

    print("KERNEL_OK")
</pallas_src>

<mosaic_0001>
module attributes {stable_mosaic.version = 11 : i64} {
  func.func @critic_kernel(%arg0: i32, %arg1: memref<3x128xf32, #tpu.memory_space<vmem>>, %arg2: memref<64x3xf32, #tpu.memory_space<vmem>>, %arg3: memref<64x1xf32, #tpu.memory_space<vmem>>, %arg4: memref<8x64xf32, #tpu.memory_space<vmem>>, %arg5: memref<8x1xf32, #tpu.memory_space<vmem>>, %arg6: memref<8x1xf32, #tpu.memory_space<vmem>>, %arg7: memref<1x1xf32, #tpu.memory_space<vmem>>, %arg8: memref<1x128xf32, #tpu.memory_space<vmem>>) attributes {dimension_semantics = [#tpu.dimension_semantics<parallel>], iteration_bounds = array<i64: 1>, scalar_prefetch = 0 : i64, scratch_operands = 0 : i64, tpu.core_type = #tpu.core_type<tc>, window_params = [{transform_indices = @transform_0, window_bounds = array<i64: 3, 128>}, {pipeline_mode = #tpu.pipeline_mode<synchronous>, transform_indices = @transform_1, window_bounds = array<i64: 64, 3>}, {pipeline_mode = #tpu.pipeline_mode<synchronous>, transform_indices = @transform_2, window_bounds = array<i64: 64, 1>}, {pipeline_mode = #tpu.pipeline_mode<synchronous>, transform_indices = @transform_3, window_bounds = array<i64: 8, 64>}, {pipeline_mode = #tpu.pipeline_mode<synchronous>, transform_indices = @transform_4, window_bounds = array<i64: 8, 1>}, {pipeline_mode = #tpu.pipeline_mode<synchronous>, transform_indices = @transform_5, window_bounds = array<i64: 8, 1>}, {pipeline_mode = #tpu.pipeline_mode<synchronous>, transform_indices = @transform_6, window_bounds = array<i64: 1, 1>}, {transform_indices = @transform_7, window_bounds = array<i64: 1, 128>}]} {
    %c0 = arith.constant 0 : index
    %c0_0 = arith.constant 0 : index
    %0 = vector.load %arg1[%c0, %c0_0] : memref<3x128xf32, #tpu.memory_space<vmem>>, vector<3x128xf32>
    %c0_1 = arith.constant 0 : index
    %c0_2 = arith.constant 0 : index
    %1 = vector.load %arg2[%c0_1, %c0_2] : memref<64x3xf32, #tpu.memory_space<vmem>>, vector<64x3xf32>
    %cst = arith.constant dense<0.000000e+00> : vector<64x128xf32>
    %2 = tpu.matmul %1, %0, %cst {dimension_numbers = #tpu.dot_dimension_numbers<[1], [0], [0], [1], [0, 0, 1, 1], [], []>} : vector<64x3xf32>, vector<3x128xf32>, vector<64x128xf32> -> vector<64x128xf32>
    %c0_3 = arith.constant 0 : index
    %c0_4 = arith.constant 0 : index
    %3 = vector.load %arg3[%c0_3, %c0_4] : memref<64x1xf32, #tpu.memory_space<vmem>>, vector<64x1xf32>
    %4 = vector.broadcast %3 : vector<64x1xf32> to vector<64x128xf32>
    %5 = arith.addf %2, %4 : vector<64x128xf32>
    %cst_5 = arith.constant 0.00999999977 : f32
    %6 = vector.broadcast %cst_5 : f32 to vector<64x128xf32>
    %7 = arith.mulf %6, %5 : vector<64x128xf32>
    %8 = arith.maximumf %5, %7 : vector<64x128xf32>
    %c0_6 = arith.constant 0 : index
    %c0_7 = arith.constant 0 : index
    %9 = vector.load %arg4[%c0_6, %c0_7] : memref<8x64xf32, #tpu.memory_space<vmem>>, vector<8x64xf32>
    %cst_8 = arith.constant dense<0.000000e+00> : vector<8x128xf32>
    %10 = tpu.matmul %9, %8, %cst_8 {dimension_numbers = #tpu.dot_dimension_numbers<[1], [0], [0], [1], [0, 0, 1, 1], [], []>} : vector<8x64xf32>, vector<64x128xf32>, vector<8x128xf32> -> vector<8x128xf32>
    %c0_9 = arith.constant 0 : index
    %c0_10 = arith.constant 0 : index
    %11 = vector.load %arg5[%c0_9, %c0_10] : memref<8x1xf32, #tpu.memory_space<vmem>>, vector<8x1xf32>
    %12 = vector.broadcast %11 : vector<8x1xf32> to vector<8x128xf32>
    %13 = arith.addf %10, %12 : vector<8x128xf32>
    %cst_11 = arith.constant 0.00999999977 : f32
    %14 = vector.broadcast %cst_11 : f32 to vector<8x128xf32>
    %15 = arith.mulf %14, %13 : vector<8x128xf32>
    %16 = arith.maximumf %13, %15 : vector<8x128xf32>
    %c0_12 = arith.constant 0 : index
    %c0_13 = arith.constant 0 : index
    %17 = vector.load %arg6[%c0_12, %c0_13] : memref<8x1xf32, #tpu.memory_space<vmem>>, vector<8x1xf32>
    %18 = vector.broadcast %17 : vector<8x1xf32> to vector<8x128xf32>
    %19 = arith.mulf %18, %16 : vector<8x128xf32>
    %cst_14 = arith.constant dense<0.000000e+00> : vector<128xf32>
    %20 = vector.multi_reduction <add>, %19, %cst_14 [0] : vector<8x128xf32> to vector<128xf32>
    %21 = vector.shape_cast %20 : vector<128xf32> to vector<1x128xf32>
    %c0_15 = arith.constant 0 : index
    %c0_16 = arith.constant 0 : index
    %22 = vector.load %arg7[%c0_15, %c0_16] : memref<1x1xf32, #tpu.memory_space<vmem>>, vector<1x1xf32>
    %23 = vector.broadcast %22 : vector<1x1xf32> to vector<1x128xf32>
    %24 = arith.addf %21, %23 : vector<1x128xf32>
    %c0_17 = arith.constant 0 : index
    %c0_18 = arith.constant 0 : index
    %25 = vector.load %arg8[%c0_17, %c0_18] : memref<1x128xf32, #tpu.memory_space<vmem>>, vector<1x128xf32>
    tpu.vector_store %arg8[%c0_17, %c0_18], %24 {strides = array<i32>} : memref<1x128xf32, #tpu.memory_space<vmem>>, vector<1x128xf32>,
    return
  }
  func.func @transform_0(%arg0: i32) -> (i32, i32) {
    %c0_i32 = arith.constant 0 : i32
    %c0_i32_0 = arith.constant 0 : i32
    return %c0_i32, %arg0 : i32, i32
  }
  func.func @transform_1(%arg0: i32) -> (i32, i32) {
    %c0_i32 = arith.constant 0 : i32
    %c0_i32_0 = arith.constant 0 : i32
    %c0_i32_1 = arith.constant 0 : i32
    return %c0_i32, %c0_i32_0 : i32, i32
  }
  func.func @transform_2(%arg0: i32) -> (i32, i32) {
    %c0_i32 = arith.constant 0 : i32
    %c0_i32_0 = arith.constant 0 : i32
    %c0_i32_1 = arith.constant 0 : i32
    return %c0_i32, %c0_i32_0 : i32, i32
  }
  func.func @transform_3(%arg0: i32) -> (i32, i32) {
    %c0_i32 = arith.constant 0 : i32
    %c0_i32_0 = arith.constant 0 : i32
    %c0_i32_1 = arith.constant 0 : i32
    return %c0_i32, %c0_i32_0 : i32, i32
  }
  func.func @transform_4(%arg0: i32) -> (i32, i32) {
    %c0_i32 = arith.constant 0 : i32
    %c0_i32_0 = arith.constant 0 : i32
    %c0_i32_1 = arith.constant 0 : i32
    return %c0_i32, %c0_i32_0 : i32, i32
  }
  func.func @transform_5(%arg0: i32) -> (i32, i32) {
    %c0_i32 = arith.constant 0 : i32
    %c0_i32_0 = arith.constant 0 : i32
    %c0_i32_1 = arith.constant 0 : i32
    return %c0_i32, %c0_i32_0 : i32, i32
  }
  func.func @transform_6(%arg0: i32) -> (i32, i32) {
    %c0_i32 = arith.constant 0 : i32
    %c0_i32_0 = arith.constant 0 : i32
    %c0_i32_1 = arith.constant 0 : i32
    return %c0_i32, %c0_i32_0 : i32, i32
  }
  func.func @transform_7(%arg0: i32) -> (i32, i32) {
    %c0_i32 = arith.constant 0 : i32
    %c0_i32_0 = arith.constant 0 : i32
    return %c0_i32, %arg0 : i32, i32
  }
}

</mosaic_0001>

<bundles_post_ra>
// kernel: tpu_custom_call.1
= control target key start
LH: loop header
LB: loop body
LE: loop exit
PB: predicated region body
PF: predicated region fallthrough
CT: control target
= control target key end

     0   :  { %s402_s0 = inlined_call_operand.vmem [shape: f32[3,128], index: 0, kind: input, shape index: {}]   ;;  %s403_s1 = inlined_call_operand.vmem [shape: f32[64,3], index: 1, kind: input, shape index: {}]   ;;  %s404_s2 = inlined_call_operand.vmem [shape: f32[64,1], index: 2, kind: input, shape index: {}]   ;;  %s405_s3 = inlined_call_operand.vmem [shape: f32[8,64], index: 3, kind: input, shape index: {}]   ;;  %s406_s4 = inlined_call_operand.vmem [shape: f32[8,1], index: 4, kind: input, shape index: {}]   ;;  %s407_s5 = inlined_call_operand.vmem [shape: f32[8,1], index: 5, kind: input, shape index: {}]   ;;  %s408_s6 = inlined_call_operand.<no memory space> [shape: f32[1,1], index: 6, kind: input, shape index: {}]   ;;  %s409_s7 = inlined_call_operand.hbm [shape: f32[1,128], index: 7, kind: output, shape index: {}]  }
   0x1   :  { %v12_v0 = vstv %s408_s6 }
   0x2   :  { %13 = vst [vmem:[#allocation2] sm:$0x1] %v12_v0 }
   0x3   :  { %v29_v1 = vld [vmem:[%s402_s0] sm:$0x7]  ;;  %vm111_vm0 = vcmask 1042432   ;;  %v45_v2 = vld [vmem:[%s404_s2 + $0x38] sm:$0xff]  ;;  %v286_v4 = vmov 0   ;;  %vm86_vm1 = vcmask 23552  }
   0x4   :  { %v33_v3 = vld [vmem:[%s403_s1 + $0x18] sm:$0xff]  ;;  %257 = vset.pattern.permute.xlu0 %v286_v4  ;;  %253 = vmatpush.msk.msra.mxu2 %vm111_vm0, %v29_v1  ;;  %v36_v5 = vld [vmem:[%s403_s1 + $0x30] sm:$0xff]  ;;  %v30_v6 = vld [vmem:[%s403_s1] sm:$0xff] }
   0x5   :  { %254 = vmatpush.msk.msra.mxu3 %vm111_vm0, %v29_v1  ;;  %83 = vperm.xlu0 %257, %v45_v2   ;;  %v43_v7 = vld [vmem:[%s404_s2 + $0x28] sm:$0xff]  ;;  %v41_v8 = vld [vmem:[%s404_s2 + $0x18] sm:$0xff] }
   0x6   :  { %247 = vmatmul.msk.f32.vlgmr.msra.gmra.mxu2 %vm86_vm1, %v33_v3  ;;  %250 = vmatmul.msk.f32.vlgmr.msra.gmra.mxu3 %vm86_vm1, %v36_v5 }
   0x7   :  { %243 = vmatpush.msk.msra.mxu0 %vm111_vm0, %v29_v1  ;;  %258 = vset.pattern.permute.xlu1 %v286_v4 }
   0x8   :  { %244 = vmatmul.msk.f32.vlgmr.msra.gmra.mxu0 %vm86_vm1, %v30_v6  ;;  %73 = vperm.xlu1 %258, %v43_v7  }
   0x9   :  { %259 = vset.pattern.permute.xlu2 %v286_v4 }
   0xa   :  { %14 = vsyncpa [#allocation4], 0  ;;  %v44_v9 = vld [vmem:[%s404_s2 + $0x30] sm:$0xff]  ;;  %63 = vperm.xlu2 %259, %v41_v8   ;;  %v34_v10 = vld [vmem:[%s403_s1 + $0x20] sm:$0xff]  ;;  %vm179_vm2 = vcmask 523264   ;;  %s234_s15 = sshll.u32 %s409_s7, 4  ;;  %s235_s15 = int_to_ptr.hbm [resolvable:$true] %s234_s15 }
   0xb   :  { %v37_v11 = vld [vmem:[%s403_s1 + $0x38] sm:$0xff]  ;;  %v31_v12 = vld [vmem:[%s403_s1 + $0x8] sm:$0xff]  ;;  %v42_v13 = vld [vmem:[%s404_s2 + $0x20] sm:$0xff] }
   0xc   :  { %v40_v14 = vld [vmem:[%s404_s2 + $0x10] sm:$0xff]  ;;  %v39_v15 = vld [vmem:[%s404_s2 + $0x8] sm:$0xff]  ;;  %v38_v18 = vld [vmem:[%s404_s2] sm:$0xff] }
   0xd   :  { %78 = vperm.xlu0 %257, %v44_v9   ;;  %v35_v16 = vld [vmem:[%s403_s1 + $0x28] sm:$0xff]  ;;  %v32_v17 = vld [vmem:[%s403_s1 + $0x10] sm:$0xff]  ;;  %v173_v19 = vld [vmem:[%s406_s4] sm:$0xff]  ;;  %s287_s4 = smov [#allocation3]  }
   0xe   :  { %248 = vmatmul.msk.f32.gmra.mxu2 %vm86_vm1, %v34_v10  ;;  %251 = vmatmul.msk.f32.gmra.mxu3 %vm86_vm1, %v37_v11  ;;  %v205_v20 = vld [vmem:[%s407_s5] sm:$0xff]  ;;  %s232_s5 = sshll.u32 %s287_s4, 4  ;;  %s233_s5 = int_to_ptr.vmem [resolvable:$true] %s232_s5 }
   0xf   :  { %v218_v21 = vld [vmem:[#allocation2] sm:$0x1] }
  0x10   :  { %245 = vmatmul.msk.f32.gmra.mxu0 %vm86_vm1, %v31_v12  ;;  %68 = vperm.xlu1 %258, %v42_v13   ;;  %v172_v62 = vld [vmem:[%s405_s3] sm:$0xff] }
  0x12   :  { %58 = vperm.xlu2 %259, %v40_v14  }
  0x15   :  { %53 = vperm.xlu0 %257, %v39_v15  }
  0x16   :  { %249 = vmatmul.msk.f32.gmra.mxu2 %vm86_vm1, %v35_v16 }
  0x18   :  { %246 = vmatmul.msk.f32.gmra.mxu0 %vm86_vm1, %v32_v17  ;;  %48 = vperm.xlu1 %258, %v38_v18  }
  0x1a   :  { %176 = vperm.xlu2 %259, %v173_v19  }
  0x1d   :  { %208 = vperm.xlu0 %257, %v205_v20  }
  0x20   :  { %221 = vperm.xlu1 %258, %v218_v21  }
  0x64   :  { %v64_v29 = vpop.permute.xlu2 %63 }
  0x6c   :  { %v59_v44 = vpop.permute.xlu2 %58 }
  0x74   :  { %v177_v63 = vpop.permute.xlu2 %176 }
  0x77   :  { %v84_v22 = vpop.permute.xlu0 %83 }
  0x7a   :  { %v74_v26 = vpop.permute.xlu1 %73 }
  0x7f   :  { %v79_v27 = vpop.permute.xlu0 %78 }
  0x82   :  { %v69_v36 = vpop.permute.xlu1 %68 }
  0x85   :  { %v132_v23 = vpop.f32.mrf.mxu0 }
  0x87   :  { %v54_v48 = vpop.permute.xlu0 %53 }
  0x89   :  { %v141_v24 = vpop.f32.mrf.mxu2  ;;  %v150_v25 = vpop.f32.mrf.mxu3 }
  0x8a   :  { %v151_v30 = vadd.f32 %v150_v25, %v79_v27  ;;  %v142_v42 = vadd.f32 %v141_v24, %v64_v29  ;;  %v49_v52 = vpop.permute.xlu1 %48 }
  0x8b   :  { %v133_v53 = vadd.f32 %v132_v23, %v49_v52 }
  0x8c   :  { %v162_v34 = vmul.f32 0.01, %v151_v30  ;;  %v159_v49 = vmul.f32 0.01, %v142_v42 }
  0x8d   :  { %v135_v28 = vpop.f32.mrf.mxu0  ;;  %v156_v58 = vmul.f32 0.01, %v133_v53 }
  0x8e   :  { %v170_v39 = vmax.f32 %v151_v30, %v162_v34  ;;  %v136_v50 = vadd.f32 %v135_v28, %v54_v48  ;;  %v167_v57 = vmax.f32 %v142_v42, %v159_v49 }
  0x8f   :  { %v164_v61 = vmax.f32 %v133_v53, %v156_v58  ;;  %v209_v4 = vpop.permute.xlu0 %208 }
  0x90   :  { %v157_v56 = vmul.f32 0.01, %v136_v50 }
  0x91   :  { %v144_v31 = vpop.f32.mrf.mxu2  ;;  %v153_v32 = vpop.f32.mrf.mxu3 }
  0x92   :  { %v154_v33 = vadd.f32 %v153_v32, %v84_v22  ;;  %v145_v38 = vadd.f32 %v144_v31, %v69_v36  ;;  %v165_v60 = vmax.f32 %v136_v50, %v157_v56  ;;  %v222_v10 = vpop.permute.xlu1 %221 }
  0x93   :  { %v224_v12 = vperm.slane %v222_v10, 0 }
  0x94   :  { %v163_v35 = vmul.f32 0.01, %v154_v33  ;;  %v160_v45 = vmul.f32 0.01, %v145_v38 }
  0x95   :  { %v138_v40 = vpop.f32.mrf.mxu0 }
  0x96   :  { %v171_v37 = vmax.f32 %v154_v33, %v163_v35  ;;  %v139_v46 = vadd.f32 %v138_v40, %v59_v44  ;;  %v168_v55 = vmax.f32 %v145_v38, %v160_v45 }
  0x98   :  { %191 = vmatpush.msra.mxu1 %v171_v37  ;;  %v158_v54 = vmul.f32 0.01, %v139_v46 }
  0x99   :  { %v147_v41 = vpop.f32.mrf.mxu2 }
  0x9a   :  { %v148_v43 = vadd.f32 %v147_v41, %v74_v26  ;;  %192 = vmatpush.msra.mxu1 %v170_v39  ;;  %v166_v59 = vmax.f32 %v139_v46, %v158_v54 }
  0x9c   :  { %v161_v47 = vmul.f32 0.01, %v148_v43 }
  0x9e   :  { %v169_v51 = vmax.f32 %v148_v43, %v161_v47 }
  0xa0   :  { %193 = vmatpush.msra.mxu1 %v169_v51 }
  0xa2   :  { %194 = vmatpush.msra.mxu1 %v168_v55 }
  0xa4   :  { %195 = vmatpush.msra.mxu1 %v167_v57 }
  0xa6   :  { %196 = vmatpush.msra.mxu1 %v166_v59 }
  0xa8   :  { %197 = vmatpush.msra.mxu1 %v165_v60 }
  0xaa   :  { %198 = vmatpush.msra.mxu1 %v164_v61 }
  0xab   :  { %252 = vmatmul.msk.f32.vlgmr.msra.gmra.mxu1 %vm179_vm2, %v172_v62 }
 0x128   :  { %v200_v0 = vpop.f32.mrf.mxu1 }
 0x129   :  { %v201_v1 = vadd.f32 %v200_v0, %v177_v63 }
 0x12b   :  { %v203_v2 = vmul.f32 0.01, %v201_v1 }
 0x12d   :  { %v204_v3 = vmax.f32 %v201_v1, %v203_v2 }
 0x12f   :  { %v211_v5 = vmul.f32 %v209_v4, %v204_v3 }
 0x131   :  { %v212_v6 = vrot.slane %v211_v5, 4 }
 0x133   :  { %v213_v7 = vadd.f32 %v212_v6, %v211_v5 }
 0x135   :  { %v214_v8 = vrot.slane %v213_v7, 2 }
 0x137   :  { %v215_v9 = vadd.f32 %v214_v8, %v213_v7 }
 0x139   :  { %v216_v11 = vrot.slane %v215_v9, 1 }
 0x13b   :  { %v217_v13 = vadd.f32 %v216_v11, %v215_v9 }
 0x13d   :  { %v225_v14 = vadd.f32 %v224_v12, %v217_v13 }
 0x13f   :  { %226 = vst [vmem:[#allocation3] sm:$0x1] %v225_v14 }
 0x140   :  { %237 = dma.vmem_to_hbm [thread:$0]  %s233_s5, 16, %s235_s15, [#allocation4]  }
 0x141   :  { %284 = dma.done.wait [#allocation4], 16  }
 0x142   :  { %285 = vsyncadd [#allocation4], 4294967280 }
 0x143   :  { %242 = vsyncpa [#allocation4], 1 }

</bundles_post_ra>
